<compile_context>
chip_gen: v6e
topology: v6e:2x2x1
jax: 0.10.0
libtpu: 0.0.40
codegen_flags: <defaults>
</compile_context>

<pallas_src>
import jax
import jax.numpy as jnp
from jax.experimental import pallas as pl
from jax.experimental.pallas import tpu as pltpu

HIDDEN = 32
BN_EPS = 1e-5
LEAKY_SLOPE = 0.01               # torch.nn.LeakyReLU default negative_slope
_LANE = 128
_TARGET_X_TILE_BYTES = 2 << 20   # ~2 MiB of x per tile: ~85% of HBM roofline in sweeps
_MAX_X_TILE_BYTES = 4 << 20      # per-buffer cap (double-buffered -> <= 8 MiB of x)


def _round_up(n, m):
    return ((n + m - 1) // m) * m


def _choose_tile_b(B, D, itemsize):
    """Lane-aligned, byte-budgeted batch tile."""
    if B <= _LANE:
        return B                                   # one block == full array (always legal)
    per_row = max(1, D * itemsize)
    tile = (_TARGET_X_TILE_BYTES // per_row) // _LANE * _LANE
    cap = (_MAX_X_TILE_BYTES // per_row) // _LANE * _LANE
    tile = max(_LANE, min(tile, max(_LANE, cap)))
    if B >= 2 * _LANE:                             # keep >= 2 tiles: both v7x TCs get work
        tile = min(tile, _round_up(-(-B // 2), _LANE))
    return max(_LANE, min(tile, (B // _LANE) * _LANE))   # first block must fit in the array


def _mlp_kernel(x_ref, w1_ref, b1_ref, w2_ref, b2_ref, out_ref):
    # ---- Linear(D, 32) with eval-mode BatchNorm folded in: bf16 inputs, f32 accumulate ----
    h = jnp.dot(x_ref[...], w1_ref[...], preferred_element_type=jnp.float32) + b1_ref[...]

    # ---- Dropout(p=0.2): identity in eval mode ----
    # TODO(synk): training-mode dropout (PyTorch RNG stream) not reproduced.

    # ---- LeakyReLU ----
    h = jnp.where(h >= 0, h, LEAKY_SLOPE * h)                         # (TB, 32) f32

    # ---- Linear(32, 1): contract the hidden axis of (1,32) x (TB,32) -> lane-dense (1,TB),
    # no h.T materialization ----
    out_row = jax.lax.dot_general(
        w2_ref[...], h,
        dimension_numbers=(((1,), (1,)), ((), ())),
        preferred_element_type=jnp.float32)
    out_ref[...] = (out_row + b2_ref[0, 0]).astype(out_ref.dtype)     # (1, TB)


def neural_net_forward(x, params, *, tile_b=None):
    """x: (B, D) float32 -> (B,) float32 (matches .squeeze(1))."""
    B, D = x.shape
    (w1, b1, gamma, beta, run_mean, run_var, w2, b2) = params

    # Fold eval-mode BatchNorm1d into the first Linear (done once, outside the kernel).
    scale = gamma * jax.lax.rsqrt(run_var + BN_EPS)                   # (1, 32)
    w1f = (w1 * scale).astype(jnp.bfloat16)                           # (D, 32)  bf16
    b1f = ((b1 - run_mean) * scale + beta).astype(jnp.float32)        # (1, 32)  f32
    w2_row = w2.reshape(1, HIDDEN).astype(jnp.float32)                # (1, 32)  f32
    b2_sc = b2.reshape(1, 1).astype(jnp.float32)                      # (1, 1)   SMEM scalar

    # bf16 activations: halves HBM traffic for the dominant x read (free if the caller
    # already holds bf16 data; otherwise XLA fuses the convert with upstream producers).
    x_bf = x.astype(jnp.bfloat16)

    if tile_b is None:
        tile = _choose_tile_b(B, D, 2)
    elif B <= _LANE:
        tile = B
    else:
        # Keep user-chosen tiles 128-aligned so the output row stores stay unmasked.
        tile = max(_LANE, min(_round_up(int(tile_b), _LANE), (B // _LANE) * _LANE))

    num_tiles = pl.cdiv(B, tile)      # last x block may be partial (no jnp.pad copy)
    out_lanes = num_tiles * tile
    full = lambda i: (0, 0)

    out = pl.pallas_call(
        _mlp_kernel,
        out_shape=jax.ShapeDtypeStruct((1, out_lanes), jnp.float32),
        grid_spec=pl.GridSpec(
            grid=(num_tiles,),
            in_specs=[
                pl.BlockSpec((tile, D), lambda i: (i, 0)),            # x tile (bf16)
                pl.BlockSpec((D, HIDDEN), full),                      # folded W1 (bf16)
                pl.BlockSpec((1, HIDDEN), full),                      # folded b1 (f32)
                pl.BlockSpec((1, HIDDEN), full),                      # W2 as a row (f32)
                pl.BlockSpec(memory_space=pltpu.MemorySpace.SMEM),    # b2 scalar
            ],
            out_specs=pl.BlockSpec((1, tile), lambda i: (0, i)),      # lane-dense output row
        ),
        compiler_params=pltpu.CompilerParams(
            dimension_semantics=("parallel",),
            vmem_limit_bytes=32 * 1024 * 1024),
    )(x_bf, w1f, b1f, w2_row, b2_sc)

    return out[0, :B]      # lanes >= B come from partial-boundary garbage rows; discard


def init_params(key, input_dim):
    """Deterministic synthetic parameters matching the PyTorch module's shapes."""
    k1, k2, k3, k4, k5, k6, k7, k8 = jax.random.split(key, 8)
    # Linear(input_dim, 32): torch weight (32, input_dim) -> stored transposed (input_dim, 32)
    bound1 = 1.0 / jnp.sqrt(input_dim)
    w1 = jax.random.uniform(k1, (input_dim, HIDDEN), jnp.float32, -bound1, bound1)
    b1 = jax.random.uniform(k2, (1, HIDDEN), jnp.float32, -bound1, bound1)
    # BatchNorm1d(32): non-trivial running stats so the BN fold is actually exercised.
    gamma = jax.random.uniform(k5, (1, HIDDEN), jnp.float32, 0.5, 1.5)
    beta = jax.random.uniform(k6, (1, HIDDEN), jnp.float32, -0.5, 0.5)
    run_mean = jax.random.uniform(k7, (1, HIDDEN), jnp.float32, -0.5, 0.5)
    run_var = jax.random.uniform(k8, (1, HIDDEN), jnp.float32, 0.5, 1.5)
    # Linear(32, 1): torch weight (1, 32) -> stored transposed (32, 1)
    bound2 = 1.0 / jnp.sqrt(HIDDEN)
    w2 = jax.random.uniform(k3, (HIDDEN, 1), jnp.float32, -bound2, bound2)
    b2 = jax.random.uniform(k4, (1, 1), jnp.float32, -bound2, bound2)
    return (w1, b1, gamma, beta, run_mean, run_var, w2, b2)


def reference_forward(x, params, *, bf16_inputs=False):
    """Pure-JAX eval-mode reference. bf16_inputs=True mirrors the kernel's input precision."""
    (w1, b1, gamma, beta, run_mean, run_var, w2, b2) = params
    scale = gamma * jax.lax.rsqrt(run_var + BN_EPS)
    if bf16_inputs:
        w1f = (w1 * scale).astype(jnp.bfloat16).astype(jnp.float32)
        b1f = (b1 - run_mean) * scale + beta
        h = x.astype(jnp.bfloat16).astype(jnp.float32) @ w1f + b1f
    else:
        h = x @ w1 + b1
        h = (h - run_mean) * scale + beta
    h = jnp.where(h >= 0, h, LEAKY_SLOPE * h)
    return (h @ w2 + b2)[:, 0]


if __name__ == "__main__":
    key = jax.random.PRNGKey(0)
    kx, kp, kx2 = jax.random.split(key, 3)

    # Small demo shape consistent with the module: (batch, input_dim) = (8, 16).
    batch, input_dim = 8, 16
    x = jax.random.normal(kx, (batch, input_dim), jnp.float32)
    params = init_params(kp, input_dim)

    out = jax.block_until_ready(neural_net_forward(x, params))
    assert out.shape == (batch,)
    # Tight check against a pure-JAX reference that uses the kernel's bf16 input precision...
    assert jnp.allclose(out, reference_forward(x, params, bf16_inputs=True),
                        atol=1e-3, rtol=1e-3)
    # ...and a loose check against full-f32 PyTorch eval-mode semantics (bf16 inputs only
    # perturb results at the ~1e-3 level for these magnitudes).
    assert jnp.allclose(out, reference_forward(x, params), atol=2e-2, rtol=2e-2)

    # Multi-tile + ragged (B % tile != 0) paths: auto tile choice and an explicit tile.
    batch2 = 300
    x2 = jax.random.normal(kx2, (batch2, input_dim), jnp.float32)
    ref2 = reference_forward(x2, params, bf16_inputs=True)

    out2 = jax.block_until_ready(neural_net_forward(x2, params))            # auto: 2 tiles of 256
    assert out2.shape == (batch2,)
    assert jnp.allclose(out2, ref2, atol=1e-3, rtol=1e-3)

    out3 = jax.block_until_ready(neural_net_forward(x2, params, tile_b=128))  # 3 tiles of 128
    assert jnp.allclose(out3, ref2, atol=1e-3, rtol=1e-3)

    print("KERNEL_OK")
</pallas_src>

<mosaic_0001>
module attributes {stable_mosaic.version = 11 : i64} {
  func.func @_mlp_kernel(%arg0: i32, %arg1: memref<8x16xbf16, #tpu.memory_space<vmem>>, %arg2: memref<16x32xbf16, #tpu.memory_space<vmem>>, %arg3: memref<1x32xf32, #tpu.memory_space<vmem>>, %arg4: memref<1x32xf32, #tpu.memory_space<vmem>>, %arg5: memref<1x1xf32, #tpu.memory_space<smem>>, %arg6: memref<1x8xf32, #tpu.memory_space<vmem>>) attributes {dimension_semantics = [#tpu.dimension_semantics<parallel>], iteration_bounds = array<i64: 1>, scalar_prefetch = 0 : i64, scratch_operands = 0 : i64, tpu.core_type = #tpu.core_type<tc>, window_params = [{transform_indices = @transform_0, window_bounds = array<i64: 8, 16>}, {pipeline_mode = #tpu.pipeline_mode<synchronous>, transform_indices = @transform_1, window_bounds = array<i64: 16, 32>}, {pipeline_mode = #tpu.pipeline_mode<synchronous>, transform_indices = @transform_2, window_bounds = array<i64: 1, 32>}, {pipeline_mode = #tpu.pipeline_mode<synchronous>, transform_indices = @transform_3, window_bounds = array<i64: 1, 32>}, {transform_indices = @transform_4, window_bounds = array<i64: 1, 1>}, {transform_indices = @transform_5, window_bounds = array<i64: 1, 8>}]} {
    %c0 = arith.constant 0 : index
    %c0_0 = arith.constant 0 : index
    %0 = vector.load %arg1[%c0, %c0_0] : memref<8x16xbf16, #tpu.memory_space<vmem>>, vector<8x16xbf16>
    %c0_1 = arith.constant 0 : index
    %c0_2 = arith.constant 0 : index
    %1 = vector.load %arg2[%c0_1, %c0_2] : memref<16x32xbf16, #tpu.memory_space<vmem>>, vector<16x32xbf16>
    %cst = arith.constant dense<0.000000e+00> : vector<8x32xf32>
    %2 = tpu.matmul %0, %1, %cst {dimension_numbers = #tpu.dot_dimension_numbers<[1], [0], [0], [1], [0, 0, 1, 1], [], []>} : vector<8x16xbf16>, vector<16x32xbf16>, vector<8x32xf32> -> vector<8x32xf32>
    %c0_3 = arith.constant 0 : index
    %c0_4 = arith.constant 0 : index
    %3 = vector.load %arg3[%c0_3, %c0_4] : memref<1x32xf32, #tpu.memory_space<vmem>>, vector<1x32xf32>
    %4 = vector.broadcast %3 : vector<1x32xf32> to vector<8x32xf32>
    %5 = arith.addf %2, %4 : vector<8x32xf32>
    %cst_5 = arith.constant 0.000000e+00 : f32
    %6 = vector.broadcast %cst_5 : f32 to vector<8x32xf32>
    %7 = arith.cmpf oge, %5, %6 : vector<8x32xf32>
    %cst_6 = arith.constant 0.00999999977 : f32
    %8 = vector.broadcast %cst_6 : f32 to vector<8x32xf32>
    %9 = arith.mulf %8, %5 : vector<8x32xf32>
    %10 = arith.select %7, %5, %9 : vector<8x32xi1>, vector<8x32xf32>
    %c0_7 = arith.constant 0 : index
    %c0_8 = arith.constant 0 : index
    %11 = vector.load %arg4[%c0_7, %c0_8] : memref<1x32xf32, #tpu.memory_space<vmem>>, vector<1x32xf32>
    %cst_9 = arith.constant dense<0.000000e+00> : vector<1x8xf32>
    %12 = tpu.matmul %11, %10, %cst_9 {dimension_numbers = #tpu.dot_dimension_numbers<[1], [1], [0], [0], [0, 0, 1, 0], [], []>} : vector<1x32xf32>, vector<8x32xf32>, vector<1x8xf32> -> vector<1x8xf32>
    %c0_10 = arith.constant 0 : index
    %c0_11 = arith.constant 0 : index
    %13 = memref.load %arg5[%c0_10, %c0_11] : memref<1x1xf32, #tpu.memory_space<smem>>
    %14 = vector.broadcast %13 : f32 to vector<1x8xf32>
    %15 = arith.addf %12, %14 : vector<1x8xf32>
    %c0_12 = arith.constant 0 : index
    %c0_13 = arith.constant 0 : index
    %16 = vector.load %arg6[%c0_12, %c0_13] : memref<1x8xf32, #tpu.memory_space<vmem>>, vector<1x8xf32>
    tpu.vector_store %arg6[%c0_12, %c0_13], %15 {strides = array<i32>} : memref<1x8xf32, #tpu.memory_space<vmem>>, vector<1x8xf32>,
    return
  }
  func.func @transform_0(%arg0: i32) -> (i32, i32) {
    %c0_i32 = arith.constant 0 : i32
    %c0_i32_0 = arith.constant 0 : i32
    return %arg0, %c0_i32 : i32, i32
  }
  func.func @transform_1(%arg0: i32) -> (i32, i32) {
    %c0_i32 = arith.constant 0 : i32
    %c0_i32_0 = arith.constant 0 : i32
    %c0_i32_1 = arith.constant 0 : i32
    return %c0_i32, %c0_i32_0 : i32, i32
  }
  func.func @transform_2(%arg0: i32) -> (i32, i32) {
    %c0_i32 = arith.constant 0 : i32
    %c0_i32_0 = arith.constant 0 : i32
    %c0_i32_1 = arith.constant 0 : i32
    return %c0_i32, %c0_i32_0 : i32, i32
  }
  func.func @transform_3(%arg0: i32) -> (i32, i32) {
    %c0_i32 = arith.constant 0 : i32
    %c0_i32_0 = arith.constant 0 : i32
    %c0_i32_1 = arith.constant 0 : i32
    return %c0_i32, %c0_i32_0 : i32, i32
  }
  func.func @transform_4(%arg0: i32) -> (i32, i32) {
    %c0_i32 = arith.constant 0 : i32
    %c0_i32_0 = arith.constant 0 : i32
    %c0_i32_1 = arith.constant 0 : i32
    return %c0_i32, %c0_i32_0 : i32, i32
  }
  func.func @transform_5(%arg0: i32) -> (i32, i32) {
    %c0_i32 = arith.constant 0 : i32
    %c0_i32_0 = arith.constant 0 : i32
    return %c0_i32, %arg0 : i32, i32
  }
}

</mosaic_0001>

<bundles_post_ra>
// kernel: tpu_custom_call.1
= control target key start
LH: loop header
LB: loop body
LE: loop exit
PB: predicated region body
PF: predicated region fallthrough
CT: control target
= control target key end

     0   :  { %11 = vsyncpa [#allocation4], 0  ;;  %s359_s0 = inlined_call_operand.hbm [shape: bf16[8,16], index: 0, kind: input, shape index: {}]   ;;  %s360_s1 = inlined_call_operand.hbm [shape: bf16[16,32], index: 1, kind: input, shape index: {}]   ;;  %s361_s2 = inlined_call_operand.vmem [shape: f32[1,32], index: 2, kind: input, shape index: {}]   ;;  %s362_s3 = inlined_call_operand.vmem [shape: f32[1,32], index: 3, kind: input, shape index: {}]   ;;  %s363_s4 = inlined_call_operand.<no memory space> [shape: f32[1,1], index: 4, kind: input, shape index: {}]   ;;  %s364_s5 = inlined_call_operand.hbm [shape: f32[1,8], index: 5, kind: output, shape index: {}]  }
   0x1   :  { %12 = vsyncpa [#allocation7], 0 }
   0x2   :  { %13 = vsyncpa [#allocation5], 0  ;;  %s304_s18 = smov [#allocation3]   ;;  %s305_s20 = smov [#allocation6]  }
   0x3   :  { %s20_s19 = sshll.u32 %s304_s18, 4  ;;  %s29_s21 = sshll.u32 %s305_s20, 4  ;;  %s21_s19 = int_to_ptr.vmem [resolvable:$true] %s20_s19  ;;  %s30_s21 = int_to_ptr.vmem [resolvable:$true] %s29_s21 }
   0x4   :  { %s246_s22 = scalar_lea.vmem %s21_s19, 64  ;;  %p251_p1 = scmp.lt.s32.totalorder %s21_s19, %s21_s19 }
   0x5   :  { %p247_p0 = scmp.ne.s32.totalorder %s21_s19, %s246_s22  ;;  %p252_p2 = scmp.lt.s32.totalorder %s246_s22, %s246_s22 }
   0x7   :  { %p253_p3 = por %p252_p2, %p251_p1 }
   0x9   :  { %p254_p4 = pnand %p253_p3, %p247_p0 }
   0xb   :  { %257 = shalt.err (!%p254_p4)
}
   0xc   :  { %23 = dma.hbm_to_vmem [thread:$0]  %s359_s0, 64, %s21_s19, [#allocation4]  }
   0xd   :  { %s266_s25 = scalar_lea.vmem %s30_s21, 128  ;;  %p271_p6 = scmp.lt.s32.totalorder %s30_s21, %s30_s21 }
   0xe   :  { %p267_p5 = scmp.ne.s32.totalorder %s30_s21, %s266_s25  ;;  %p272_p7 = scmp.lt.s32.totalorder %s266_s25, %s266_s25 }
  0x10   :  { %p273_p8 = por %p272_p7, %p271_p6 }
  0x12   :  { %p274_p9 = pnand %p273_p8, %p267_p5 }
  0x14   :  { %277 = shalt.err (!%p274_p9)
}
  0x15   :  { %s306_s26 = smov 64   ;;  %s307_s27 = smov 4  }
  0x16   :  { %35 = dma.hbm_to_vmem [thread:$0]  %s360_s1, 128, %s30_s21, [#allocation7], %s306_s26, %s306_s26, %s307_s27  }
  0x17   :  { %298 = dma.done.wait [#allocation4], 64  }
  0x18   :  { %299 = vsyncadd [#allocation4], 4294967232 }
  0x19   :  { %300 = dma.done.wait [#allocation7], 128  }
  0x1a   :  { %301 = vsyncadd [#allocation7], 4294967168  ;;  %v308_v0 = vmov 0.0   ;;  %vm309_vm0 = vmmov 0   ;;  %v237_v1 = vld [vmem:[#allocation6] sm:$0xff]   ;;  %vm65_vm1 = vcmask 130048   ;;  %v114_v12 = vstv %s363_s4 }
  0x1b   :  { %219 = vmatprep.subr.bf16.mxu0 %v308_v0  ;;  %221 = vmatprep.mubr.msk.bf16.mxu0 %vm309_vm0, %v308_v0  ;;  %v49_v2 = vld [vmem:[#allocation3] sm:$0xf]  ;;  %vm115_vm3 = vcmask 261120   ;;  %vm192_vm4 = vcmask 57344  }
  0x1c   :  { %225 = vmatprep.subr.mxu1 %v308_v0  ;;  %227 = vmatprep.mubr.msk.f32.mxu1 %vm309_vm0, %v308_v0  ;;  %v210_v3 = vld [vmem:[%s361_s2] ss:$0 sm:$0xff]  ;;  %s310_s2 = smov [#allocation8]  }
  0x1d   :  { %220 = vmatpush3.bf16.msra.mxu0 %v237_v1  ;;  %v112_v11 = vld [vmem:[%s362_s3] sm:$0x1]  ;;  %s200_s9 = sshll.u32 %s310_s2, 4  ;;  %s201_s9 = int_to_ptr.vmem [resolvable:$true] %s200_s9 }
  0x1e   :  { %s278_s10 = scalar_lea.vmem %s201_s9, 16  ;;  %s282_s11 = scalar_lea.vmem %s201_s9, 32 }
  0x1f   :  { %p279_p10 = scmp.ne.s32.totalorder %s201_s9, %s278_s10  ;;  %p283_p11 = scmp.lt.s32.totalorder %s201_s9, %s201_s9 }
  0x20   :  { %222 = vmatmul.mubr.msk.bf16.vlgmr.msra.gmra.mxu0 %vm65_vm1, %v49_v2  ;;  %p284_p12 = scmp.lt.s32.totalorder %s282_s11, %s278_s10 }
  0x22   :  { %p285_p13 = por %p284_p12, %p283_p11 }
  0x24   :  { %p286_p0 = pnand %p285_p13, %p279_p10 }
  0xe0   :  { %v103_v4 = vpop.f32.mrf.mxu0 }
  0xe1   :  { %v104_v5 = vadd.f32 %v210_v3, %v103_v4 }
  0xe2   :  { %v223_v6 = vpop.f32.mrf.mxu0 }
  0xe3   :  { %v110_v7 = vmul.f32 0.01, %v104_v5  ;;  %vm109_vm2 = vcmp.ge.f32.partialorder %v104_v5, 0.0 }
  0xe4   :  { %v106_v8 = vpop.f32.mrf.mxu0 }
  0xe5   :  { %v111_v9 = vsel %vm109_vm2, %v104_v5, %v110_v7 }
  0xe6   :  { %v224_v10 = vpop.f32.mrf.mxu0  ;;  %226 = vmatpush3.xpose.msk.msra.mxu1 %vm115_vm3, %v111_v9 }
  0xe9   :  { %228 = vmatmul.mubr.msk.f32.vlgmr.msra.gmra.mxu1 %vm115_vm3, %v112_v11 }
 0x1a9   :  { %v188_v13 = vpop.f32.mrf.mxu1 }
 0x1aa   :  { %v189_v14 = vadd.f32 %v188_v13, %v114_v12 }
 0x1ab   :  { %v229_v15 = vpop.f32.mrf.mxu1 }
 0x1ac   :  { %193 = vst.msk [vmem:[#allocation8] sm:$0x1] %vm192_vm4, %v189_v14 }
 0x1ad   :  { %289 = shalt.err (!%p286_p0)
}
 0x1ae   :  { %203 = dma.vmem_to_hbm [thread:$0]  %s201_s9, 16, %s364_s5, [#allocation5]  }
 0x1af   :  { %302 = dma.done.wait [#allocation5], 16  }
 0x1b0   :  { %303 = vsyncadd [#allocation5], 4294967280 }
 0x1b1   :  { %207 = vsyncpa [#allocation4], 1 }
 0x1b2   :  { %208 = vsyncpa [#allocation7], 1 }
 0x1b3   :  { %209 = vsyncpa [#allocation5], 1 }

</bundles_post_ra>
